<compile_context>
chip_gen: v7x
topology: tpu7x:2x2x1
jax: 0.10.0
libtpu: 0.0.40
codegen_flags: <defaults>
</compile_context>

<pallas_src>
import jax
import jax.numpy as jnp
from jax.experimental import pallas as pl
from jax.experimental.pallas import tpu as pltpu


_TILE_MAX = 4096  # per-tile work is tiny; fewer, bigger grid steps win.


def _cdiv(a, b):
    return (a + b - 1) // b


def _round_up(x, m):
    return ((x + m - 1) // m) * m


def _choose_tile_b(batch):
    """Batch-tile size: multiple of 128 lanes, minimal padding, >=2 steps for large B."""
    if batch < 2 * 128:
        return batch  # single block covering the whole batch
    num_tiles = max(2, _cdiv(batch, _TILE_MAX))  # >=2 so both v7x TCs get work
    return _round_up(_cdiv(batch, num_tiles), 128)


def _critic_mlp_kernel(obs_ref, act_ref,
                       w1o_ref, w1a_ref, b1_ref,
                       w2_ref, b2_ref,
                       w3_ref, b3_ref,
                       w4_ref, b4_ref,
                       o_ref):
    """Fused 4-layer MLP, feature-major: (Linear -> ReLU) x3 -> Linear.

    Activations are (features, tile_b): features on sublanes, batch on the
    128-lane axis. All matmuls hit the MXU with f32 accumulation; ReLUs run on
    the VPU after the bf16 downcast. b4 is a scalar in SMEM. The q output is a
    lane-dense (1, tile_b) row.
    """
    cdt = w2_ref.dtype  # compute dtype (bf16 or f32)

    # Cast streaming activation tiles to the compute dtype on the VPU
    # (no wrapper-side cast copy; a no-op on the f32 path).
    xo = obs_ref[...].astype(cdt)   # (obs_dim, tile_b)
    xa = act_ref[...].astype(cdt)   # (act_dim, tile_b)

    # Layer 1: split across obs/act so torch.cat is never materialized.
    h = (jnp.dot(w1o_ref[...], xo, preferred_element_type=jnp.float32)
         + jnp.dot(w1a_ref[...], xa, preferred_element_type=jnp.float32)
         + b1_ref[...])                       # (h1, tile_b), f32
    h = jnp.maximum(h.astype(cdt), 0)         # ReLU after downcast

    h = jnp.dot(w2_ref[...], h, preferred_element_type=jnp.float32) + b2_ref[...]
    h = jnp.maximum(h.astype(cdt), 0)

    h = jnp.dot(w3_ref[...], h, preferred_element_type=jnp.float32) + b3_ref[...]
    h = jnp.maximum(h.astype(cdt), 0)

    q = jnp.dot(w4_ref[...], h, preferred_element_type=jnp.float32) + b4_ref[0, 0]
    o_ref[...] = q.astype(o_ref.dtype)        # (1, tile_b) lane-dense store


def critic_forward(obs, act, params, *, compute_dtype=jnp.bfloat16, tile_b=None):
    """Pallas-backed Critic forward. obs: (B, obs_dim), act: (B, act_dim) -> q: (B,)."""
    (w1o, w1a, b1), (w2, b2), (w3, b3), (w4, b4) = params

    batch, obs_dim = obs.shape
    act_dim = act.shape[1]
    h1 = w1o.shape[0]
    h2 = w2.shape[0]
    h3 = w3.shape[0]

    if tile_b is None:
        tile_b = _choose_tile_b(batch)
    assert tile_b == batch or tile_b % 128 == 0, "tile_b must be the full batch or a multiple of 128"
    num_tiles = _cdiv(batch, tile_b)

    # Feature-major inputs (batch on the lane axis). These transposes vanish if
    # the caller stores obs/act feature-major upstream.
    obs_t = obs.T   # (obs_dim, B)
    act_t = act.T   # (act_dim, B)

    # Weights in the compute dtype (a few KB, cast once here); biases stay f32
    # and are added to the f32 MXU accumulators.
    w1o_c = w1o.astype(compute_dtype)
    w1a_c = w1a.astype(compute_dtype)
    w2_c = w2.astype(compute_dtype)
    w3_c = w3.astype(compute_dtype)
    w4_c = w4.astype(compute_dtype)

    act_itemsize = jnp.dtype(obs.dtype).itemsize
    w_itemsize = jnp.dtype(compute_dtype).itemsize
    n_weight = obs_dim * h1 + act_dim * h1 + h1 * h2 + h2 * h3 + h3
    flops = 2 * batch * n_weight
    bytes_accessed = (batch * (obs_dim + act_dim) * act_itemsize   # activations in
                      + n_weight * w_itemsize                      # weights
                      + (h1 + h2 + h3 + 1) * 4                     # biases (f32)
                      + batch * 4)                                 # q out (f32)

    q2d = pl.pallas_call(
        _critic_mlp_kernel,
        out_shape=jax.ShapeDtypeStruct((1, batch), jnp.float32),
        grid=(num_tiles,),
        in_specs=[
            # streaming activation tiles (batch on the lane axis)
            pl.BlockSpec((obs_dim, tile_b), lambda i: (0, i)),
            pl.BlockSpec((act_dim, tile_b), lambda i: (0, i)),
            # resident weights / biases (same block every grid step -> no re-DMA)
            pl.BlockSpec((h1, obs_dim), lambda i: (0, 0)),
            pl.BlockSpec((h1, act_dim), lambda i: (0, 0)),
            pl.BlockSpec((h1, 1), lambda i: (0, 0)),
            pl.BlockSpec((h2, h1), lambda i: (0, 0)),
            pl.BlockSpec((h2, 1), lambda i: (0, 0)),
            pl.BlockSpec((h3, h2), lambda i: (0, 0)),
            pl.BlockSpec((h3, 1), lambda i: (0, 0)),
            pl.BlockSpec((1, h3), lambda i: (0, 0)),
            # scalar output bias in SMEM
            pl.BlockSpec((1, 1), lambda i: (0, 0),
                         memory_space=pltpu.MemorySpace.SMEM),
        ],
        out_specs=pl.BlockSpec((1, tile_b), lambda i: (0, i)),
        compiler_params=pltpu.CompilerParams(
            dimension_semantics=("parallel",)),
        cost_estimate=pl.CostEstimate(
            flops=flops, transcendentals=0, bytes_accessed=bytes_accessed),
    )(obs_t, act_t, w1o_c, w1a_c, b1, w2_c, b2, w3_c, b3, w4_c, b4)

    # (1, B) -> (B,), matching torch.squeeze(q, -1).
    return q2d[0]


def init_critic_params(key, obs_dim, act_dim, hidden_size):
    """Mirrors nn.Linear default init (U[-1/sqrt(fan_in), +1/sqrt(fan_in)]).

    Weights stored torch-style as (out_features, in_features); W1 is split into
    (W1_obs, W1_act) column-wise so the kernel never needs a concatenated
    input. Biases stored as (out_features, 1); b4 is (1, 1).
    """
    dims = [obs_dim + act_dim] + list(hidden_size) + [1]
    layers = []
    for i in range(4):
        fan_in, fan_out = dims[i], dims[i + 1]
        key, kw, kb = jax.random.split(key, 3)
        bound = 1.0 / (fan_in ** 0.5)
        w = jax.random.uniform(kw, (fan_out, fan_in), jnp.float32, -bound, bound)
        b = jax.random.uniform(kb, (fan_out, 1), jnp.float32, -bound, bound)
        layers.append((w, b))
    (w1, b1), l2, l3, l4 = layers
    return ((w1[:, :obs_dim], w1[:, obs_dim:], b1), l2, l3, l4)


def _reference_forward(obs, act, params):
    """Pure-JAX f32 reference (equivalent to torch.cat + CriticMLP)."""
    (w1o, w1a, b1), (w2, b2), (w3, b3), (w4, b4) = params
    x = jnp.concatenate([obs, act], axis=1)
    w1 = jnp.concatenate([w1o, w1a], axis=1)           # (h1, obs_dim + act_dim)
    h = jnp.maximum(x @ w1.T + b1[:, 0], 0.0)
    h = jnp.maximum(h @ w2.T + b2[:, 0], 0.0)
    h = jnp.maximum(h @ w3.T + b3[:, 0], 0.0)
    q = h @ w4.T + b4[0, 0]
    return jnp.squeeze(q, axis=-1)


if __name__ == "__main__":
    key = jax.random.PRNGKey(0)

    batch = 8
    obs_dim = 16
    act_dim = 4
    hidden_size = [32, 32, 32]

    k_obs, k_act, k_params = jax.random.split(key, 3)
    obs = jax.random.normal(k_obs, (batch, obs_dim), jnp.float32)
    act = jax.random.normal(k_act, (batch, act_dim), jnp.float32)
    params = init_critic_params(k_params, obs_dim, act_dim, hidden_size)

    q_ref = _reference_forward(obs, act, params)

    # f32 compute path: tight check against the reference.
    q_f32 = jax.block_until_ready(
        critic_forward(obs, act, params, compute_dtype=jnp.float32))
    assert q_f32.shape == (batch,), f"unexpected output shape {q_f32.shape}"
    assert jnp.allclose(q_f32, q_ref, atol=1e-4, rtol=1e-4), "f32 mismatch vs reference"

    # bf16 compute path (default, bf16-native MXU): looser tolerance.
    q_bf16 = jax.block_until_ready(critic_forward(obs, act, params))
    assert q_bf16.shape == (batch,)
    assert jnp.allclose(q_bf16, q_ref, atol=1e-1, rtol=1e-1), "bf16 mismatch vs reference"

    # Ragged small batch: single partial block (tile_b == B == 13).
    obs13 = jax.random.normal(jax.random.PRNGKey(1), (13, obs_dim), jnp.float32)
    act13 = jax.random.normal(jax.random.PRNGKey(2), (13, act_dim), jnp.float32)
    q13 = jax.block_until_ready(
        critic_forward(obs13, act13, params, compute_dtype=jnp.float32))
    assert q13.shape == (13,)
    assert jnp.allclose(q13, _reference_forward(obs13, act13, params),
                        atol=1e-4, rtol=1e-4), "ragged-batch mismatch vs reference"

    # Multi-tile grid with a partial (masked) last block: B=300, tile_b=128 -> 3 steps.
    obs300 = jax.random.normal(jax.random.PRNGKey(3), (300, obs_dim), jnp.float32)
    act300 = jax.random.normal(jax.random.PRNGKey(4), (300, act_dim), jnp.float32)
    q300 = jax.block_until_ready(
        critic_forward(obs300, act300, params, compute_dtype=jnp.float32, tile_b=128))
    assert q300.shape == (300,)
    assert jnp.allclose(q300, _reference_forward(obs300, act300, params),
                        atol=1e-4, rtol=1e-4), "multi-tile mismatch vs reference"

    print("KERNEL_OK")
</pallas_src>

<mosaic_0001>
module attributes {stable_mosaic.version = 11 : i64} {
  func.func @_critic_mlp_kernel(%arg0: i32, %arg1: memref<16x8xf32, #tpu.memory_space<vmem>>, %arg2: memref<4x8xf32, #tpu.memory_space<vmem>>, %arg3: memref<32x16xf32, #tpu.memory_space<vmem>>, %arg4: memref<32x4xf32, #tpu.memory_space<vmem>>, %arg5: memref<32x1xf32, #tpu.memory_space<vmem>>, %arg6: memref<32x32xf32, #tpu.memory_space<vmem>>, %arg7: memref<32x1xf32, #tpu.memory_space<vmem>>, %arg8: memref<32x32xf32, #tpu.memory_space<vmem>>, %arg9: memref<32x1xf32, #tpu.memory_space<vmem>>, %arg10: memref<1x32xf32, #tpu.memory_space<vmem>>, %arg11: memref<1x1xf32, #tpu.memory_space<smem>>, %arg12: memref<1x8xf32, #tpu.memory_space<vmem>>) attributes {dimension_semantics = [#tpu.dimension_semantics<parallel>], iteration_bounds = array<i64: 1>, scalar_prefetch = 0 : i64, scratch_operands = 0 : i64, tpu.core_type = #tpu.core_type<tc>, window_params = [{transform_indices = @transform_0, window_bounds = array<i64: 16, 8>}, {transform_indices = @transform_1, window_bounds = array<i64: 4, 8>}, {pipeline_mode = #tpu.pipeline_mode<synchronous>, transform_indices = @transform_2, window_bounds = array<i64: 32, 16>}, {pipeline_mode = #tpu.pipeline_mode<synchronous>, transform_indices = @transform_3, window_bounds = array<i64: 32, 4>}, {pipeline_mode = #tpu.pipeline_mode<synchronous>, transform_indices = @transform_4, window_bounds = array<i64: 32, 1>}, {pipeline_mode = #tpu.pipeline_mode<synchronous>, transform_indices = @transform_5, window_bounds = array<i64: 32, 32>}, {pipeline_mode = #tpu.pipeline_mode<synchronous>, transform_indices = @transform_6, window_bounds = array<i64: 32, 1>}, {pipeline_mode = #tpu.pipeline_mode<synchronous>, transform_indices = @transform_7, window_bounds = array<i64: 32, 32>}, {pipeline_mode = #tpu.pipeline_mode<synchronous>, transform_indices = @transform_8, window_bounds = array<i64: 32, 1>}, {pipeline_mode = #tpu.pipeline_mode<synchronous>, transform_indices = @transform_9, window_bounds = array<i64: 1, 32>}, {transform_indices = @transform_10, window_bounds = array<i64: 1, 1>}, {transform_indices = @transform_11, window_bounds = array<i64: 1, 8>}]} {
    %c0 = arith.constant 0 : index
    %c0_0 = arith.constant 0 : index
    %0 = vector.load %arg1[%c0, %c0_0] : memref<16x8xf32, #tpu.memory_space<vmem>>, vector<16x8xf32>
    %c0_1 = arith.constant 0 : index
    %c0_2 = arith.constant 0 : index
    %1 = vector.load %arg2[%c0_1, %c0_2] : memref<4x8xf32, #tpu.memory_space<vmem>>, vector<4x8xf32>
    %c0_3 = arith.constant 0 : index
    %c0_4 = arith.constant 0 : index
    %2 = vector.load %arg3[%c0_3, %c0_4] : memref<32x16xf32, #tpu.memory_space<vmem>>, vector<32x16xf32>
    %cst = arith.constant dense<0.000000e+00> : vector<32x8xf32>
    %3 = tpu.matmul %2, %0, %cst {dimension_numbers = #tpu.dot_dimension_numbers<[1], [0], [0], [1], [0, 0, 1, 1], [], []>} : vector<32x16xf32>, vector<16x8xf32>, vector<32x8xf32> -> vector<32x8xf32>
    %c0_5 = arith.constant 0 : index
    %c0_6 = arith.constant 0 : index
    %4 = vector.load %arg4[%c0_5, %c0_6] : memref<32x4xf32, #tpu.memory_space<vmem>>, vector<32x4xf32>
    %cst_7 = arith.constant dense<0.000000e+00> : vector<32x8xf32>
    %5 = tpu.matmul %4, %1, %cst_7 {dimension_numbers = #tpu.dot_dimension_numbers<[1], [0], [0], [1], [0, 0, 1, 1], [], []>} : vector<32x4xf32>, vector<4x8xf32>, vector<32x8xf32> -> vector<32x8xf32>
    %6 = arith.addf %3, %5 : vector<32x8xf32>
    %c0_8 = arith.constant 0 : index
    %c0_9 = arith.constant 0 : index
    %7 = vector.load %arg5[%c0_8, %c0_9] : memref<32x1xf32, #tpu.memory_space<vmem>>, vector<32x1xf32>
    %8 = vector.broadcast %7 : vector<32x1xf32> to vector<32x8xf32>
    %9 = arith.addf %6, %8 : vector<32x8xf32>
    %cst_10 = arith.constant 0.000000e+00 : f32
    %10 = vector.broadcast %cst_10 : f32 to vector<32x8xf32>
    %11 = arith.maximumf %9, %10 : vector<32x8xf32>
    %c0_11 = arith.constant 0 : index
    %c0_12 = arith.constant 0 : index
    %12 = vector.load %arg6[%c0_11, %c0_12] : memref<32x32xf32, #tpu.memory_space<vmem>>, vector<32x32xf32>
    %cst_13 = arith.constant dense<0.000000e+00> : vector<32x8xf32>
    %13 = tpu.matmul %12, %11, %cst_13 {dimension_numbers = #tpu.dot_dimension_numbers<[1], [0], [0], [1], [0, 0, 1, 1], [], []>} : vector<32x32xf32>, vector<32x8xf32>, vector<32x8xf32> -> vector<32x8xf32>
    %c0_14 = arith.constant 0 : index
    %c0_15 = arith.constant 0 : index
    %14 = vector.load %arg7[%c0_14, %c0_15] : memref<32x1xf32, #tpu.memory_space<vmem>>, vector<32x1xf32>
    %15 = vector.broadcast %14 : vector<32x1xf32> to vector<32x8xf32>
    %16 = arith.addf %13, %15 : vector<32x8xf32>
    %cst_16 = arith.constant 0.000000e+00 : f32
    %17 = vector.broadcast %cst_16 : f32 to vector<32x8xf32>
    %18 = arith.maximumf %16, %17 : vector<32x8xf32>
    %c0_17 = arith.constant 0 : index
    %c0_18 = arith.constant 0 : index
    %19 = vector.load %arg8[%c0_17, %c0_18] : memref<32x32xf32, #tpu.memory_space<vmem>>, vector<32x32xf32>
    %cst_19 = arith.constant dense<0.000000e+00> : vector<32x8xf32>
    %20 = tpu.matmul %19, %18, %cst_19 {dimension_numbers = #tpu.dot_dimension_numbers<[1], [0], [0], [1], [0, 0, 1, 1], [], []>} : vector<32x32xf32>, vector<32x8xf32>, vector<32x8xf32> -> vector<32x8xf32>
    %c0_20 = arith.constant 0 : index
    %c0_21 = arith.constant 0 : index
    %21 = vector.load %arg9[%c0_20, %c0_21] : memref<32x1xf32, #tpu.memory_space<vmem>>, vector<32x1xf32>
    %22 = vector.broadcast %21 : vector<32x1xf32> to vector<32x8xf32>
    %23 = arith.addf %20, %22 : vector<32x8xf32>
    %cst_22 = arith.constant 0.000000e+00 : f32
    %24 = vector.broadcast %cst_22 : f32 to vector<32x8xf32>
    %25 = arith.maximumf %23, %24 : vector<32x8xf32>
    %c0_23 = arith.constant 0 : index
    %c0_24 = arith.constant 0 : index
    %26 = vector.load %arg10[%c0_23, %c0_24] : memref<1x32xf32, #tpu.memory_space<vmem>>, vector<1x32xf32>
    %cst_25 = arith.constant dense<0.000000e+00> : vector<1x8xf32>
    %27 = tpu.matmul %26, %25, %cst_25 {dimension_numbers = #tpu.dot_dimension_numbers<[1], [0], [0], [1], [0, 0, 1, 1], [], []>} : vector<1x32xf32>, vector<32x8xf32>, vector<1x8xf32> -> vector<1x8xf32>
    %c0_26 = arith.constant 0 : index
    %c0_27 = arith.constant 0 : index
    %28 = memref.load %arg11[%c0_26, %c0_27] : memref<1x1xf32, #tpu.memory_space<smem>>
    %29 = vector.broadcast %28 : f32 to vector<1x8xf32>
    %30 = arith.addf %27, %29 : vector<1x8xf32>
    %c0_28 = arith.constant 0 : index
    %c0_29 = arith.constant 0 : index
    %31 = vector.load %arg12[%c0_28, %c0_29] : memref<1x8xf32, #tpu.memory_space<vmem>>, vector<1x8xf32>
    tpu.vector_store %arg12[%c0_28, %c0_29], %30 {strides = array<i32>} : memref<1x8xf32, #tpu.memory_space<vmem>>, vector<1x8xf32>,
    return
  }
  func.func @transform_0(%arg0: i32) -> (i32, i32) {
    %c0_i32 = arith.constant 0 : i32
    %c0_i32_0 = arith.constant 0 : i32
    return %c0_i32, %arg0 : i32, i32
  }
  func.func @transform_1(%arg0: i32) -> (i32, i32) {
    %c0_i32 = arith.constant 0 : i32
    %c0_i32_0 = arith.constant 0 : i32
    return %c0_i32, %arg0 : i32, i32
  }
  func.func @transform_2(%arg0: i32) -> (i32, i32) {
    %c0_i32 = arith.constant 0 : i32
    %c0_i32_0 = arith.constant 0 : i32
    %c0_i32_1 = arith.constant 0 : i32
    return %c0_i32, %c0_i32_0 : i32, i32
  }
  func.func @transform_3(%arg0: i32) -> (i32, i32) {
    %c0_i32 = arith.constant 0 : i32
    %c0_i32_0 = arith.constant 0 : i32
    %c0_i32_1 = arith.constant 0 : i32
    return %c0_i32, %c0_i32_0 : i32, i32
  }
  func.func @transform_4(%arg0: i32) -> (i32, i32) {
    %c0_i32 = arith.constant 0 : i32
    %c0_i32_0 = arith.constant 0 : i32
    %c0_i32_1 = arith.constant 0 : i32
    return %c0_i32, %c0_i32_0 : i32, i32
  }
  func.func @transform_5(%arg0: i32) -> (i32, i32) {
    %c0_i32 = arith.constant 0 : i32
    %c0_i32_0 = arith.constant 0 : i32
    %c0_i32_1 = arith.constant 0 : i32
    return %c0_i32, %c0_i32_0 : i32, i32
  }
  func.func @transform_6(%arg0: i32) -> (i32, i32) {
    %c0_i32 = arith.constant 0 : i32
    %c0_i32_0 = arith.constant 0 : i32
    %c0_i32_1 = arith.constant 0 : i32
    return %c0_i32, %c0_i32_0 : i32, i32
  }
  func.func @transform_7(%arg0: i32) -> (i32, i32) {
    %c0_i32 = arith.constant 0 : i32
    %c0_i32_0 = arith.constant 0 : i32
    %c0_i32_1 = arith.constant 0 : i32
    return %c0_i32, %c0_i32_0 : i32, i32
  }
  func.func @transform_8(%arg0: i32) -> (i32, i32) {
    %c0_i32 = arith.constant 0 : i32
    %c0_i32_0 = arith.constant 0 : i32
    %c0_i32_1 = arith.constant 0 : i32
    return %c0_i32, %c0_i32_0 : i32, i32
  }
  func.func @transform_9(%arg0: i32) -> (i32, i32) {
    %c0_i32 = arith.constant 0 : i32
    %c0_i32_0 = arith.constant 0 : i32
    %c0_i32_1 = arith.constant 0 : i32
    return %c0_i32, %c0_i32_0 : i32, i32
  }
  func.func @transform_10(%arg0: i32) -> (i32, i32) {
    %c0_i32 = arith.constant 0 : i32
    %c0_i32_0 = arith.constant 0 : i32
    %c0_i32_1 = arith.constant 0 : i32
    return %c0_i32, %c0_i32_0 : i32, i32
  }
  func.func @transform_11(%arg0: i32) -> (i32, i32) {
    %c0_i32 = arith.constant 0 : i32
    %c0_i32_0 = arith.constant 0 : i32
    return %c0_i32, %arg0 : i32, i32
  }
}

</mosaic_0001>

<bundles_post_ra>
// kernel: tpu_custom_call.1
= control target key start
LH: loop header
LB: loop body
LE: loop exit
PB: predicated region body
PF: predicated region fallthrough
CT: control target
= control target key end

     0   :  { %vm64_vm0 = vcmask 1043456   ;;  %vm51_vm1 = vcmask 31744   ;;  %v802_v7 = vmov 0   ;;  %vm153_vm2 = vcmask 130048   ;;  %s995_s0 = inlined_call_operand.vmem [shape: f32[16,8], index: 0, kind: input, shape index: {}]   ;;  %s996_s1 = inlined_call_operand.vmem [shape: f32[4,8], index: 1, kind: input, shape index: {}]   ;;  %s997_s2 = inlined_call_operand.vmem [shape: f32[32,16], index: 2, kind: input, shape index: {}]   ;;  %s998_s3 = inlined_call_operand.vmem [shape: f32[32,4], index: 3, kind: input, shape index: {}]   ;;  %s999_s4 = inlined_call_operand.vmem [shape: f32[32,1], index: 4, kind: input, shape index: {}]   ;;  %s1000_s5 = inlined_call_operand.vmem [shape: f32[32,32], index: 5, kind: input, shape index: {}]   ;;  %s1001_s6 = inlined_call_operand.vmem [shape: f32[32,1], index: 6, kind: input, shape index: {}]   ;;  %s1002_s7 = inlined_call_operand.vmem [shape: f32[32,32], index: 7, kind: input, shape index: {}]   ;;  %s1003_s8 = inlined_call_operand.vmem [shape: f32[32,1], index: 8, kind: input, shape index: {}]   ;;  %s1004_s9 = inlined_call_operand.vmem [shape: f32[1,32], index: 9, kind: input, shape index: {}]   ;;  %s1005_s10 = inlined_call_operand.<no memory space> [shape: f32[1,1], index: 10, kind: input, shape index: {}]   ;;  %s1006_s11 = inlined_call_operand.hbm [shape: f32[1,8], index: 11, kind: output, shape index: {}]  }
   0x1   :  { %v42_v0 = vld [vmem:[%s996_s1] sm:$0xf]  ;;  %v48_v2 = vld [vmem:[%s998_s3 + $0x8] sm:$0xff]  ;;  %v49_v5 = vld [vmem:[%s998_s3 + $0x10] sm:$0xff]  ;;  %776 = vset.pattern.permute.xlu0 %v802_v7  ;;  %777 = vset.pattern.permute.xlu1 %v802_v7 }
   0x2   :  { %v47_v1 = vld [vmem:[%s998_s3] sm:$0xff]  ;;  %684 = vmatprep.subr.msk.mxu0 %vm64_vm0, %v42_v0  ;;  %v41_v4 = vld [vmem:[%s995_s0 + $0x8] sm:$0xff]  ;;  %v50_v9 = vld [vmem:[%s998_s3 + $0x18] sm:$0xff] }
   0x3   :  { %686 = vmatprep.mubr.msk.f32.mxu0 %vm51_vm1, %v47_v1  ;;  %v40_v3 = vld [vmem:[%s995_s0] sm:$0xff]  ;;  %685 = vmatpush3.msk.msra.mxu0 %vm64_vm0, %v42_v0  ;;  %v253_v10 = vld [vmem:[%s999_s4 + $0x10] sm:$0xff]  ;;  %v252_v12 = vld [vmem:[%s999_s4 + $0x8] sm:$0xff] }
   0x4   :  { %v741_v6 = vpack.c.bf16 %v41_v4, %v40_v3  ;;  %687 = vmatmul.mubr.msk.f32.vlgmr.msra.gmra.mrb[0].mxu0 %vm51_vm1, %v48_v2  ;;  %v251_v8 = vld [vmem:[%s999_s4] sm:$0xff]  ;;  %267 = vperm.xlu1 %777, %v253_v10   ;;  %v254_v13 = vld [vmem:[%s999_s4 + $0x18] sm:$0xff] }
   0x5   :  { %689 = vmatprep.mubr.msk.f32.mxu0 %vm51_vm1, %v49_v5  ;;  %v43_v11 = vld [vmem:[%s997_s2] sm:$0xff]  ;;  %257 = vperm.xlu0 %776, %v251_v8  }
   0x6   :  { %742 = vmatprep.subr.bf16.mxu0 %v741_v6 }
   0x7   :  { %744 = vmatpush3.bf16.msra.mxu0 %v741_v6 }
   0x8   :  { %690 = vmatmul.mubr.msk.f32.gmra.mrb[2].mxu0 %vm51_vm1, %v50_v9 }
   0x9   :  { %17 = vsyncpa [#allocation4], 0  ;;  %696 = vmatprep.mubr.msk.f32.mxu0 %vm153_vm2, %v43_v11  ;;  %v44_v14 = vld [vmem:[%s997_s2 + $0x8] sm:$0xff]  ;;  %v45_v15 = vld [vmem:[%s997_s2 + $0x10] sm:$0xff]  ;;  %262 = vperm.xlu0 %776, %v252_v12   ;;  %vm311_vm3 = vcmask 261120   ;;  %v803_v5 = vmov 0.0|0.0  }
   0xa   :  { %272 = vperm.xlu1 %777, %v254_v13   ;;  %v287_v16 = vld [vmem:[%s1001_s6] sm:$0xff]  ;;  %v288_v17 = vld [vmem:[%s1001_s6 + $0x8] sm:$0xff]  ;;  %v46_v18 = vld [vmem:[%s997_s2 + $0x18] sm:$0xff]  ;;  %761 = vmatprep.subr.bf16.mxu0 %v803_v5  ;;  %vm804_vm4 = vmmov 0   ;;  %v805_v6 = vmov 0.0   ;;  %s806_s0 = smov [#allocation3]  }
   0xb   :  { %v289_v19 = vld [vmem:[%s1001_s6 + $0x10] sm:$0xff]  ;;  %v290_v20 = vld [vmem:[%s1001_s6 + $0x18] sm:$0xff]  ;;  %v417_v21 = vld [vmem:[%s1003_s8] sm:$0xff]  ;;  %s626_s12 = sshll.u32 %s806_s0, 4  ;;  %vm618_vm5 = vcmask 57344   ;;  %s627_s12 = int_to_ptr.vmem [resolvable:$true] %s626_s12 }
   0xc   :  { %697 = vmatmul.mubr.msk.f32.vlgmr.msra.gmra.mrb[0].mxu0 %vm153_vm2, %v44_v14  ;;  %v418_v22 = vld [vmem:[%s1003_s8 + $0x8] sm:$0xff]  ;;  %v419_v23 = vld [vmem:[%s1003_s8 + $0x10] sm:$0xff]  ;;  %v420_v24 = vld [vmem:[%s1003_s8 + $0x18] sm:$0xff]  ;;  %s778_s13 = scalar_lea.vmem %s627_s12, 16  ;;  %s782_s2 = scalar_lea.vmem %s627_s12, 32 }
   0xd   :  { %699 = vmatprep.mubr.msk.f32.mxu0 %vm153_vm2, %v45_v15  ;;  %293 = vperm.xlu0 %776, %v287_v16   ;;  %v283_v25 = vld [vmem:[%s1000_s5] sm:$0xff]  ;;  %v284_v44 = vld [vmem:[%s1000_s5 + $0x8] sm:$0xff]  ;;  %v285_v45 = vld [vmem:[%s1000_s5 + $0x10] sm:$0xff]  ;;  %p779_p0 = scmp.ne.s32.totalorder %s627_s12, %s778_s13  ;;  %p783_p1 = scmp.lt.s32.totalorder %s627_s12, %s627_s12 }
   0xe   :  { %298 = vperm.xlu1 %777, %v288_v17   ;;  %710 = vmatprep.mubr.msk.f32.mxu1 %vm311_vm3, %v283_v25  ;;  %v286_v46 = vld [vmem:[%s1000_s5 + $0x18] sm:$0xff]  ;;  %v413_v47 = vld [vmem:[%s1002_s7] sm:$0xff]  ;;  %v414_v2 = vld [vmem:[%s1002_s7 + $0x8] sm:$0xff]  ;;  %p784_p2 = scmp.lt.s32.totalorder %s782_s2, %s778_s13 }
   0xf   :  { %v415_v3 = vld [vmem:[%s1002_s7 + $0x10] sm:$0xff]  ;;  %v416_v4 = vld [vmem:[%s1002_s7 + $0x18] sm:$0xff]  ;;  %v542_v25 = vld [vmem:[%s1004_s9] sm:$0x1] }
  0x10   :  { %700 = vmatmul.mubr.msk.f32.gmra.mrb[2].mxu0 %vm153_vm2, %v46_v18  ;;  %p785_p3 = por %p784_p2, %p783_p1 }
  0x11   :  { %303 = vperm.xlu0 %776, %v289_v19   ;;  %738 = vmatprep.mubr.msk.f32.mxu0 %vm804_vm4, %v805_v6 }
  0x12   :  { %308 = vperm.xlu1 %777, %v290_v20   ;;  %p786_p4 = pnand %p785_p3, %p779_p0 }
  0x15   :  { %423 = vperm.xlu0 %776, %v417_v21  }
  0x16   :  { %428 = vperm.xlu1 %777, %v418_v22  }
  0x19   :  { %433 = vperm.xlu0 %776, %v419_v23  }
  0x1a   :  { %438 = vperm.xlu1 %777, %v420_v24  }
  0x83   :  { %v268_v27 = vpop.permute.xlu1 %267 }
  0x84   :  { %v258_v26 = vpop.permute.xlu0 %257 }
  0x88   :  { %v263_v28 = vpop.permute.xlu0 %262 }
  0x89   :  { %v273_v34 = vpop.permute.xlu1 %272 }
  0x8c   :  { %v294_v49 = vpop.permute.xlu0 %293 }
  0x8d   :  { %v299_v48 = vpop.permute.xlu1 %298 }
  0x90   :  { %v304_v58 = vpop.permute.xlu0 %303 }
  0x91   :  { %v309_v55 = vpop.permute.xlu1 %308 }
  0x94   :  { %v424_v8 = vpop.permute.xlu0 %423 }
  0x95   :  { %v429_v7 = vpop.permute.xlu1 %428 }
  0x98   :  { %v434_v17 = vpop.permute.xlu0 %433 }
  0x99   :  { %v439_v14 = vpop.permute.xlu1 %438 }
  0xdf   :  { %v698_v29 = vpop.f32.mrb[0].mxu0 }
  0xe0   :  { %v276_v30 = vadd.f32 %v698_v29, %v263_v28  ;;  %v232_v31 = vpop.f32.mrb[1].mxu0 }
  0xe1   :  { %v275_v32 = vadd.f32 %v258_v26, %v232_v31  ;;  %v544_v26 = vstv %s1005_s10 }
  0xe2   :  { %v280_v33 = vmax.f32 %v276_v30, 0.0 }
  0xe3   :  { %v279_v35 = vmax.f32 %v275_v32, 0.0  ;;  %v701_v36 = vpop.f32.mrb[2].mxu0 }
  0xe4   :  { %v278_v37 = vadd.f32 %v701_v36, %v273_v34  ;;  %v242_v38 = vpop.f32.mrb[3].mxu0 }
  0xe5   :  { %v277_v39 = vadd.f32 %v268_v27, %v242_v38  ;;  %v745_v40 = vpack.c.bf16 %v280_v33, %v279_v35 }
  0xe6   :  { %v282_v41 = vmax.f32 %v278_v37, 0.0 }
  0xe7   :  { %v281_v42 = vmax.f32 %v277_v39, 0.0  ;;  %746 = vmatprep.subr.bf16.mxu1 %v745_v40 }
  0xe8   :  { %748 = vmatpush3.bf16.msra.mxu1 %v745_v40 }
  0xe9   :  { %v749_v43 = vpack.c.bf16 %v282_v41, %v281_v42 }
  0xeb   :  { %750 = vmatprep.subr.bf16.mxu1 %v749_v43 }
  0xec   :  { %752 = vmatpush3.bf16.msra.mxu1 %v749_v43 }
  0xef   :  { %711 = vmatmul.mubr.msk.f32.vlgmr.msra.gmra.mrb[0].mxu1 %vm311_vm3, %v284_v44 }
  0xf0   :  { %713 = vmatprep.mubr.msk.f32.mxu1 %vm311_vm3, %v285_v45 }
  0xf3   :  { %714 = vmatmul.mubr.msk.f32.gmra.mrb[2].mxu1 %vm311_vm3, %v286_v46 }
  0xf4   :  { %724 = vmatprep.mubr.msk.f32.mxu1 %vm311_vm3, %v413_v47 }
 0x1c2   :  { %v712_v50 = vpop.f32.mrb[0].mxu1 }
 0x1c3   :  { %v396_v51 = vadd.f32 %v712_v50, %v299_v48  ;;  %v390_v52 = vpop.f32.mrb[1].mxu1 }
 0x1c4   :  { %v391_v53 = vadd.f32 %v390_v52, %v294_v49 }
 0x1c5   :  { %v410_v54 = vmax.f32 %v396_v51, 0.0 }
 0x1c6   :  { %v409_v56 = vmax.f32 %v391_v53, 0.0  ;;  %v715_v57 = vpop.f32.mrb[2].mxu1 }
 0x1c7   :  { %v406_v59 = vadd.f32 %v715_v57, %v309_v55  ;;  %v400_v60 = vpop.f32.mrb[3].mxu1 }
 0x1c8   :  { %v753_v61 = vpack.c.bf16 %v410_v54, %v409_v56  ;;  %v401_v62 = vadd.f32 %v400_v60, %v304_v58 }
 0x1c9   :  { %v412_v63 = vmax.f32 %v406_v59, 0.0 }
 0x1ca   :  { %v411_v0 = vmax.f32 %v401_v62, 0.0  ;;  %754 = vmatprep.subr.bf16.mxu1 %v753_v61 }
 0x1cb   :  { %756 = vmatpush3.bf16.msra.mxu1 %v753_v61 }
 0x1cc   :  { %v757_v1 = vpack.c.bf16 %v412_v63, %v411_v0 }
 0x1ce   :  { %758 = vmatprep.subr.bf16.mxu1 %v757_v1 }
 0x1cf   :  { %760 = vmatpush3.bf16.msra.mxu1 %v757_v1 }
 0x1d2   :  { %725 = vmatmul.mubr.msk.f32.vlgmr.msra.gmra.mrb[4].mxu1 %vm311_vm3, %v414_v2 }
 0x1d3   :  { %727 = vmatprep.mubr.msk.f32.mxu1 %vm311_vm3, %v415_v3 }
 0x1d6   :  { %728 = vmatmul.mubr.msk.f32.gmra.mrb[6].mxu1 %vm311_vm3, %v416_v4 }
 0x2a5   :  { %v726_v9 = vpop.f32.mrb[4].mxu1 }
 0x2a6   :  { %v525_v10 = vadd.f32 %v726_v9, %v429_v7  ;;  %v519_v11 = vpop.f32.mrb[5].mxu1 }
 0x2a7   :  { %v520_v12 = vadd.f32 %v519_v11, %v424_v8 }
 0x2a8   :  { %v539_v13 = vmax.f32 %v525_v10, 0.0 }
 0x2a9   :  { %v538_v15 = vmax.f32 %v520_v12, 0.0  ;;  %v729_v16 = vpop.f32.mrb[6].mxu1 }
 0x2aa   :  { %v535_v18 = vadd.f32 %v729_v16, %v439_v14  ;;  %v529_v19 = vpop.f32.mrb[7].mxu1 }
 0x2ab   :  { %v762_v20 = vpack.c.bf16 %v539_v13, %v538_v15  ;;  %v530_v21 = vadd.f32 %v529_v19, %v434_v17 }
 0x2ac   :  { %v541_v22 = vmax.f32 %v535_v18, 0.0 }
 0x2ad   :  { %v540_v23 = vmax.f32 %v530_v21, 0.0  ;;  %763 = vmatpush3.bf16.msra.mxu0 %v762_v20 }
 0x2ae   :  { %764 = vmatprep.subr.bf16.mxu0 %v803_v5 }
 0x2af   :  { %v765_v24 = vpack.c.bf16 %v541_v22, %v540_v23 }
 0x2b1   :  { %766 = vmatpush3.bf16.msra.mxu0 %v765_v24 }
 0x2b4   :  { %739 = vmatmul.mubr.msk.f32.vlgmr.msra.gmra.mrb[4].mxu0 %vm311_vm3, %v542_v25 }
 0x387   :  { %v614_v27 = vpop.f32.mrb[4].mxu0 }
 0x388   :  { %v615_v28 = vadd.f32 %v614_v27, %v544_v26  ;;  %v740_v29 = vpop.f32.mrb[5].mxu0 }
 0x38a   :  { %619 = vst.msk [vmem:[#allocation3] sm:$0x1] %vm618_vm5, %v615_v28 }
 0x38b   :  { %789 = shalt.err (!%p786_p4)
}
 0x38c   :  { %s790_s10 = scalar_lea.hbm %s1006_s11, 16 }
 0x38d   :  { %p791_p5 = scmp.ne.s32.totalorder %s1006_s11, %s790_s10  ;;  %p794_p6 = scmp.lt.u32.totalorder %s790_s10, %s1006_s11 }
 0x38f   :  { %p796_p7 = pnand %p794_p6, %p791_p5 }
 0x391   :  { %799 = shalt.err (!%p796_p7)
}
 0x392   :  { %629 = dma.vmem_to_hbm [thread:$0]  %s627_s12, 16, %s1006_s11, [#allocation4]  }
 0x393   :  { %800 = dma.done.wait [#allocation4], 16  }
 0x394   :  { %801 = vsyncadd [#allocation4], 4294967280 }
 0x395   :  { %633 = vsyncpa [#allocation4], 1 }

</bundles_post_ra>
